<compile_context>
chip_gen: v7x
topology: tpu7x:2x2x1
jax: 0.10.0
libtpu: 0.0.40
codegen_flags: <defaults>
</compile_context>

<pallas_src>
import jax
import jax.numpy as jnp
from jax import lax
from jax.experimental import pallas as pl
from jax.experimental.pallas import tpu as pltpu


def _round_up(x, m):
    return ((x + m - 1) // m) * m


def _cdiv(a, b):
    return -(-a // b)


def _vmem_caps():
    """Return (working-set budget bytes, vmem_limit_bytes), generation aware."""
    phys = None
    try:
        phys = int(pltpu.get_tpu_info().vmem_capacity_bytes)
    except Exception:
        phys = None
    if not phys:
        try:
            kind = jax.devices()[0].device_kind.lower()
        except Exception:
            kind = ""
        # 128 MiB VMEM parts vs. conservative default (v7x-class has 64 MiB).
        phys = (128 * 1024 * 1024
                if any(v in kind for v in ("v4", "v5", "v6"))
                else 64 * 1024 * 1024)
    return int(phys * 0.62), int(phys * 0.75)


def _pick_feature_tile(dp, cap):
    """Largest tile <= cap that divides dp (dp is a multiple of 128).
    Prefers 256-multiples to fill the 256x256 MXUs on v6e/v7x."""
    if dp <= cap:
        return dp
    for step in (256, 128):
        t = (cap // step) * step
        while t >= step:
            if dp % t == 0:
                return t
            t -= step
    return 128


def _cross_vmem_bytes(tb, td1, td2, isz):
    """Working-set estimate for the cross-Gram kernel, incl. temporaries."""
    inputs = 2 * isz * tb * (td1 + td2)      # double-buffered DMA tiles
    loads = isz * tb * (td1 + td2)           # in-kernel loaded copies
    acc_and_sq = 2 * 4 * td1 * td2           # f32 accumulator + g*g reduce temp
    return inputs + loads + acc_and_sq + 2 * 4 * 128


def _choose_cross_tiles(b, d1p, d2p, isz, budget):
    # Re-balance TB so Bp stays close to B (avoid zero-row MXU/DMA waste).
    n_b = max(1, _cdiv(b, 512))
    tb = _round_up(_cdiv(b, n_b), 8)
    td1 = _pick_feature_tile(d1p, 2048)
    td2 = _pick_feature_tile(d2p, 2048)
    while _cross_vmem_bytes(tb, td1, td2, isz) > budget:
        if td1 >= td2 and td1 > 128:
            td1 = _pick_feature_tile(d1p, td1 // 2)
        elif td2 > 128:
            td2 = _pick_feature_tile(d2p, td2 // 2)
        elif tb > 8:
            tb = max(8, _round_up(tb // 2, 8))
        else:
            break
    return tb, td1, td2


# ----------------------------------------------------------------------------
# Kernels
# ----------------------------------------------------------------------------
def _cross_gram_kernel(x1_ref, x2_ref, out_ref, acc_ref):
    """grid = (d1 blocks, d2 blocks, batch blocks); batch is the reduction."""
    kb = pl.program_id(2)

    @pl.when(kb == 0)
    def _init():
        acc_ref[...] = jnp.zeros_like(acc_ref)

    # (TB, TD1) x (TB, TD2) contracted over the batch dim -> (TD1, TD2),
    # f32 MXU accumulation, no explicit transpose (dim-0 contraction).
    acc_ref[...] += lax.dot_general(
        x1_ref[...], x2_ref[...],
        dimension_numbers=(((0,), (0,)), ((), ())),
        preferred_element_type=jnp.float32,
    )

    @pl.when(kb == pl.num_programs(2) - 1)
    def _finalize():
        g = acc_ref[...]
        out_ref[...] = jnp.full(out_ref.shape, jnp.sum(g * g), dtype=jnp.float32)


def _bb_gram_kernel(x1_ref, x2_ref, out_ref, g1_ref, g2_ref):
    """grid = (feature blocks,): accumulate the two (B, B) self-Grams and emit
    sum(G1 * G2) at the end (== sum((X1n.T @ X2n)**2))."""
    k = pl.program_id(0)

    @pl.when(k == 0)
    def _init():
        g1_ref[...] = jnp.zeros_like(g1_ref)
        g2_ref[...] = jnp.zeros_like(g2_ref)

    dn = (((1,), (1,)), ((), ()))  # contract the feature dim (A @ A.T)
    g1_ref[...] += lax.dot_general(x1_ref[...], x1_ref[...], dn,
                                   preferred_element_type=jnp.float32)
    g2_ref[...] += lax.dot_general(x2_ref[...], x2_ref[...], dn,
                                   preferred_element_type=jnp.float32)

    @pl.when(k == pl.num_programs(0) - 1)
    def _finalize():
        out_ref[...] = jnp.full(out_ref.shape,
                                jnp.sum(g1_ref[...] * g2_ref[...]),
                                dtype=jnp.float32)


# ----------------------------------------------------------------------------
# Wrapper
# ----------------------------------------------------------------------------
def diff_loss(x1, x2, *, use_bf16_matmul=True, force_path=None,
              block_b=None, block_d1=None, block_d2=None):
    """Pallas TPU implementation of DiffLoss.forward(input1, input2)."""
    assert x1.ndim == 2 and x2.ndim == 2 and x1.shape[0] == x2.shape[0]
    B, D1 = x1.shape
    _, D2 = x2.shape
    f32 = jnp.float32

    xf1 = x1.astype(f32)
    xf2 = x2.astype(f32)

    # --- XLA pre-pass: center + L2-normalize ONCE (hoisted out of the hot
    # loop), then a single cast to the MXU input dtype. ----------------------
    x1c = xf1 - jnp.mean(xf1, axis=0, keepdims=True)
    x2c = xf2 - jnp.mean(xf2, axis=0, keepdims=True)
    x1n = x1c * (1.0 / (jnp.sqrt(jnp.sum(x1c * x1c, axis=1, keepdims=True)) + 1e-6))
    x2n = x2c * (1.0 / (jnp.sqrt(jnp.sum(x2c * x2c, axis=1, keepdims=True)) + 1e-6))
    in_dtype = jnp.bfloat16 if use_bf16_matmul else f32
    x1n = x1n.astype(in_dtype)
    x2n = x2n.astype(in_dtype)
    isz = jnp.dtype(in_dtype).itemsize

    budget, vmem_limit = _vmem_caps()
    D1p = _round_up(D1, 128)
    D2p = _round_up(D2, 128)
    denom = float(D1 * D2)  # TRUE denominator: zero padding is a no-op

    def pad2(a, rows, cols):
        return jnp.pad(a, ((0, rows - a.shape[0]), (0, cols - a.shape[1])))

    # --- dispatch: (B, B) Gram formulation when the batch is much smaller
    # than both feature dims (B*D1*D2 MACs -> ~2*B^2*max(D1,D2) MACs). -------
    Bp_bb = _round_up(B, 8)
    use_bb = (2 * B < min(D1p, D2p)) and (Bp_bb <= 1024)
    if force_path == "cross":
        use_bb = False
    elif force_path == "bb":
        use_bb = True

    if use_bb:
        Dp = max(D1p, D2p)  # zero-pad both to a common feature extent (exact)
        td = block_d1 if block_d1 is not None else _pick_feature_tile(Dp, 2048)
        while (6 * isz * Bp_bb * td + 3 * 4 * Bp_bb * Bp_bb) > budget and td > 128:
            td = _pick_feature_tile(Dp, td // 2)
        assert td % 128 == 0 and Dp % td == 0
        n_d = Dp // td

        x1p = pad2(x1n, Bp_bb, Dp)
        x2p = pad2(x2n, Bp_bb, Dp)

        out = pl.pallas_call(
            _bb_gram_kernel,
            out_shape=jax.ShapeDtypeStruct((1, 128), f32),
            grid_spec=pltpu.PrefetchScalarGridSpec(
                num_scalar_prefetch=0,
                grid=(n_d,),
                in_specs=[
                    pl.BlockSpec((Bp_bb, td), lambda k: (0, k)),
                    pl.BlockSpec((Bp_bb, td), lambda k: (0, k)),
                ],
                out_specs=pl.BlockSpec((1, 128), lambda k: (0, 0)),
                scratch_shapes=[pltpu.VMEM((Bp_bb, Bp_bb), f32),
                                pltpu.VMEM((Bp_bb, Bp_bb), f32)],
            ),
            compiler_params=pltpu.CompilerParams(
                dimension_semantics=("arbitrary",),
                vmem_limit_bytes=vmem_limit,
            ),
        )(x1p, x2p)
        return out[0, 0] / denom

    # --- cross-Gram path: grid = (d1, d2, batch) ----------------------------
    tb_a, td1_a, td2_a = _choose_cross_tiles(B, D1p, D2p, isz, budget)
    TB = block_b if block_b is not None else tb_a
    TD1 = block_d1 if block_d1 is not None else td1_a
    TD2 = block_d2 if block_d2 is not None else td2_a
    assert TB % 8 == 0 and TD1 % 128 == 0 and TD2 % 128 == 0
    assert D1p % TD1 == 0 and D2p % TD2 == 0

    Bp = _round_up(B, TB)
    n_d1, n_d2, n_b = D1p // TD1, D2p // TD2, Bp // TB

    x1p = pad2(x1n, Bp, D1p)
    x2p = pad2(x2n, Bp, D2p)

    partials = pl.pallas_call(
        _cross_gram_kernel,
        out_shape=jax.ShapeDtypeStruct((n_d1, n_d2, 1, 128), f32),
        grid_spec=pltpu.PrefetchScalarGridSpec(
            num_scalar_prefetch=0,
            grid=(n_d1, n_d2, n_b),
            in_specs=[
                pl.BlockSpec((TB, TD1), lambda i, j, k: (k, i)),
                pl.BlockSpec((TB, TD2), lambda i, j, k: (k, j)),
            ],
            out_specs=pl.BlockSpec((1, 1, 1, 128), lambda i, j, k: (i, j, 0, 0)),
            scratch_shapes=[pltpu.VMEM((TD1, TD2), f32)],  # gram accumulator
        ),
        compiler_params=pltpu.CompilerParams(
            dimension_semantics=("parallel", "parallel", "arbitrary"),
            vmem_limit_bytes=vmem_limit,
        ),
    )(x1p, x2p)

    # Per-block partial sums of squares; divide by the TRUE D1*D2.
    return jnp.sum(partials[:, :, 0, 0]) / denom


def diff_loss_ref(x1, x2):
    """Pure-JAX reference (mirrors the PyTorch forward exactly)."""
    x1 = x1.astype(jnp.float32)
    x2 = x2.astype(jnp.float32)
    x1c = x1 - jnp.mean(x1, axis=0, keepdims=True)
    x2c = x2 - jnp.mean(x2, axis=0, keepdims=True)
    n1 = jnp.linalg.norm(x1c, axis=1, keepdims=True)
    n2 = jnp.linalg.norm(x2c, axis=1, keepdims=True)
    x1n = x1c / (n1 + 1e-6)
    x2n = x2c / (n2 + 1e-6)
    return jnp.mean((x1n.T @ x2n) ** 2)


if __name__ == "__main__":
    key = jax.random.PRNGKey(0)
    k1, k2, k3, k4, k5, k6 = jax.random.split(key, 6)

    # Case 1: the module's natural small shape (batch=8, hidden=32 per stream).
    # 2*B < min(D1, D2) -> auto-dispatches to the (B, B) Gram kernel.
    B, D1, D2 = 8, 32, 32
    x1 = jax.random.normal(k1, (B, D1), dtype=jnp.float32)
    x2 = jax.random.normal(k2, (B, D2), dtype=jnp.float32)
    ref = jax.block_until_ready(diff_loss_ref(x1, x2))
    out_f32 = jax.block_until_ready(diff_loss(x1, x2, use_bf16_matmul=False))
    out_bf16 = jax.block_until_ready(diff_loss(x1, x2))  # bf16 MXU path
    assert jnp.allclose(out_f32, ref, rtol=1e-2, atol=1e-6), (out_f32, ref)
    assert jnp.allclose(out_bf16, ref, rtol=3e-2, atol=1e-4), (out_bf16, ref)

    # Case 2: force the tiled cross-Gram path -- exercises batch padding, the
    # multi-step batch reduction and both "parallel" gram axes
    # (grid = (2, 1, 3): D1p=256/TD1=128, D2p=128, Bp=48/TB=16).
    B, D1, D2 = 40, 256, 96
    y1 = jax.random.normal(k3, (B, D1), dtype=jnp.float32)
    y2 = jax.random.normal(k4, (B, D2), dtype=jnp.float32)
    ref2 = jax.block_until_ready(diff_loss_ref(y1, y2))
    out2 = jax.block_until_ready(
        diff_loss(y1, y2, use_bf16_matmul=False, force_path="cross",
                  block_b=16, block_d1=128, block_d2=128))
    assert jnp.allclose(out2, ref2, rtol=1e-2, atol=1e-6), (out2, ref2)

    # Case 3: auto dispatch lands on the cross-Gram path (B >= D/2).
    B, D1, D2 = 96, 64, 48
    z1 = jax.random.normal(k5, (B, D1), dtype=jnp.float32)
    z2 = jax.random.normal(k6, (B, D2), dtype=jnp.float32)
    ref3 = jax.block_until_ready(diff_loss_ref(z1, z2))
    out3 = jax.block_until_ready(diff_loss(z1, z2, use_bf16_matmul=False))
    assert jnp.allclose(out3, ref3, rtol=1e-2, atol=1e-6), (out3, ref3)

    print("KERNEL_OK")
</pallas_src>

<mosaic_0001>
module attributes {stable_mosaic.version = 11 : i64} {
  func.func @_bb_gram_kernel(%arg0: i32, %arg1: memref<8x128xf32, #tpu.memory_space<vmem>>, %arg2: memref<8x128xf32, #tpu.memory_space<vmem>>, %arg3: memref<1x128xf32, #tpu.memory_space<vmem>>, %arg4: memref<8x8xf32, #tpu.memory_space<vmem>>, %arg5: memref<8x8xf32, #tpu.memory_space<vmem>>) attributes {dimension_semantics = [#tpu.dimension_semantics<arbitrary>], iteration_bounds = array<i64: 1>, scalar_prefetch = 0 : i64, scratch_operands = 2 : i64, tpu.core_type = #tpu.core_type<tc>, window_params = [{transform_indices = @transform_0, window_bounds = array<i64: 8, 128>}, {transform_indices = @transform_1, window_bounds = array<i64: 8, 128>}, {pipeline_mode = #tpu.pipeline_mode<synchronous>, transform_indices = @transform_2, window_bounds = array<i64: 1, 128>}]} {
    %c0_i32 = arith.constant 0 : i32
    %0 = arith.cmpi eq, %arg0, %c0_i32 : i32
    %1 = arith.extui %0 : i1 to i32
    %c0_i32_0 = arith.constant 0 : i32
    %2 = arith.cmpi ne, %1, %c0_i32_0 : i32
    scf.if %2 {
      %cst_19 = arith.constant 0.000000e+00 : f32
      %18 = vector.broadcast %cst_19 : f32 to vector<8x8xf32>
      %c0_20 = arith.constant 0 : index
      %c0_21 = arith.constant 0 : index
      %19 = vector.load %arg4[%c0_20, %c0_21] : memref<8x8xf32, #tpu.memory_space<vmem>>, vector<8x8xf32>
      tpu.vector_store %arg4[%c0_20, %c0_21], %18 {strides = array<i32>} : memref<8x8xf32, #tpu.memory_space<vmem>>, vector<8x8xf32>,
      %cst_22 = arith.constant 0.000000e+00 : f32
      %20 = vector.broadcast %cst_22 : f32 to vector<8x8xf32>
      %c0_23 = arith.constant 0 : index
      %c0_24 = arith.constant 0 : index
      %21 = vector.load %arg5[%c0_23, %c0_24] : memref<8x8xf32, #tpu.memory_space<vmem>>, vector<8x8xf32>
      tpu.vector_store %arg5[%c0_23, %c0_24], %20 {strides = array<i32>} : memref<8x8xf32, #tpu.memory_space<vmem>>, vector<8x8xf32>,
    } else {
    }
    %c0 = arith.constant 0 : index
    %c0_1 = arith.constant 0 : index
    %3 = vector.load %arg4[%c0, %c0_1] : memref<8x8xf32, #tpu.memory_space<vmem>>, vector<8x8xf32>
    %c0_2 = arith.constant 0 : index
    %c0_3 = arith.constant 0 : index
    %4 = vector.load %arg1[%c0_2, %c0_3] : memref<8x128xf32, #tpu.memory_space<vmem>>, vector<8x128xf32>
    %c0_4 = arith.constant 0 : index
    %c0_5 = arith.constant 0 : index
    %5 = vector.load %arg1[%c0_4, %c0_5] : memref<8x128xf32, #tpu.memory_space<vmem>>, vector<8x128xf32>
    %cst = arith.constant dense<0.000000e+00> : vector<8x8xf32>
    %6 = tpu.matmul %4, %5, %cst {dimension_numbers = #tpu.dot_dimension_numbers<[1], [1], [0], [0], [0, 0, 1, 0], [], []>} : vector<8x128xf32>, vector<8x128xf32>, vector<8x8xf32> -> vector<8x8xf32>
    %7 = arith.addf %3, %6 : vector<8x8xf32>
    %c0_6 = arith.constant 0 : index
    %c0_7 = arith.constant 0 : index
    %8 = vector.load %arg4[%c0_6, %c0_7] : memref<8x8xf32, #tpu.memory_space<vmem>>, vector<8x8xf32>
    tpu.vector_store %arg4[%c0_6, %c0_7], %7 {strides = array<i32>} : memref<8x8xf32, #tpu.memory_space<vmem>>, vector<8x8xf32>,
    %c0_8 = arith.constant 0 : index
    %c0_9 = arith.constant 0 : index
    %9 = vector.load %arg5[%c0_8, %c0_9] : memref<8x8xf32, #tpu.memory_space<vmem>>, vector<8x8xf32>
    %c0_10 = arith.constant 0 : index
    %c0_11 = arith.constant 0 : index
    %10 = vector.load %arg2[%c0_10, %c0_11] : memref<8x128xf32, #tpu.memory_space<vmem>>, vector<8x128xf32>
    %c0_12 = arith.constant 0 : index
    %c0_13 = arith.constant 0 : index
    %11 = vector.load %arg2[%c0_12, %c0_13] : memref<8x128xf32, #tpu.memory_space<vmem>>, vector<8x128xf32>
    %cst_14 = arith.constant dense<0.000000e+00> : vector<8x8xf32>
    %12 = tpu.matmul %10, %11, %cst_14 {dimension_numbers = #tpu.dot_dimension_numbers<[1], [1], [0], [0], [0, 0, 1, 0], [], []>} : vector<8x128xf32>, vector<8x128xf32>, vector<8x8xf32> -> vector<8x8xf32>
    %13 = arith.addf %9, %12 : vector<8x8xf32>
    %c0_15 = arith.constant 0 : index
    %c0_16 = arith.constant 0 : index
    %14 = vector.load %arg5[%c0_15, %c0_16] : memref<8x8xf32, #tpu.memory_space<vmem>>, vector<8x8xf32>
    tpu.vector_store %arg5[%c0_15, %c0_16], %13 {strides = array<i32>} : memref<8x8xf32, #tpu.memory_space<vmem>>, vector<8x8xf32>,
    %c0_i32_17 = arith.constant 0 : i32
    %15 = arith.cmpi eq, %arg0, %c0_i32_17 : i32
    %16 = arith.extui %15 : i1 to i32
    %c0_i32_18 = arith.constant 0 : i32
    %17 = arith.cmpi ne, %16, %c0_i32_18 : i32
    scf.if %17 {
      %c0_19 = arith.constant 0 : index
      %c0_20 = arith.constant 0 : index
      %18 = vector.load %arg4[%c0_19, %c0_20] : memref<8x8xf32, #tpu.memory_space<vmem>>, vector<8x8xf32>
      %c0_21 = arith.constant 0 : index
      %c0_22 = arith.constant 0 : index
      %19 = vector.load %arg5[%c0_21, %c0_22] : memref<8x8xf32, #tpu.memory_space<vmem>>, vector<8x8xf32>
      %20 = arith.mulf %18, %19 : vector<8x8xf32>
      %21 = vector.shape_cast %20 : vector<8x8xf32> to vector<1x8x8xf32>
      %cst_23 = arith.constant dense<0.000000e+00> : vector<1xf32>
      %22 = vector.multi_reduction <add>, %21, %cst_23 [1, 2] : vector<1x8x8xf32> to vector<1xf32>
      %23 = vector.shape_cast %22 : vector<1xf32> to vector<1x1x1xf32>
      %24 = vector.extract %23[0, 0, 0] : f32 from vector<1x1x1xf32>
      %25 = vector.broadcast %24 : f32 to vector<1x128xf32>
      %c0_24 = arith.constant 0 : index
      %c0_25 = arith.constant 0 : index
      %26 = vector.load %arg3[%c0_24, %c0_25] : memref<1x128xf32, #tpu.memory_space<vmem>>, vector<1x128xf32>
      tpu.vector_store %arg3[%c0_24, %c0_25], %25 {strides = array<i32>} : memref<1x128xf32, #tpu.memory_space<vmem>>, vector<1x128xf32>,
    } else {
    }
    return
  }
  func.func @transform_0(%arg0: i32) -> (i32, i32) {
    %c0_i32 = arith.constant 0 : i32
    %c0_i32_0 = arith.constant 0 : i32
    return %c0_i32, %arg0 : i32, i32
  }
  func.func @transform_1(%arg0: i32) -> (i32, i32) {
    %c0_i32 = arith.constant 0 : i32
    %c0_i32_0 = arith.constant 0 : i32
    return %c0_i32, %arg0 : i32, i32
  }
  func.func @transform_2(%arg0: i32) -> (i32, i32) {
    %c0_i32 = arith.constant 0 : i32
    %c0_i32_0 = arith.constant 0 : i32
    %c0_i32_1 = arith.constant 0 : i32
    return %c0_i32, %c0_i32_0 : i32, i32
  }
}

</mosaic_0001>

<bundles_post_ra>
// kernel: tpu_custom_call.1
= control target key start
LH: loop header
LB: loop body
LE: loop exit
PB: predicated region body
PF: predicated region fallthrough
CT: control target
= control target key end

     0   :  { %7 = vsyncpa [#allocation5], 0  ;;  %s380_s0 = inlined_call_operand.hbm [shape: f32[8,128], index: 0, kind: input, shape index: {}]   ;;  %s381_s1 = inlined_call_operand.hbm [shape: f32[8,128], index: 1, kind: input, shape index: {}]   ;;  %s382_s2 = inlined_call_operand.hbm [shape: f32[1,128], index: 2, kind: output, shape index: {}]  }
   0x1   :  { %8 = vsyncpa [#allocation8], 0 }
   0x2   :  { %9 = vsyncpa [#allocation6], 0  ;;  %s319_s9 = smov [#allocation4]   ;;  %s320_s11 = smov [#allocation7]  }
   0x3   :  { %s16_s10 = sshll.u32 %s319_s9, 4  ;;  %s26_s12 = sshll.u32 %s320_s11, 4  ;;  %s17_s10 = int_to_ptr.vmem [resolvable:$true] %s16_s10  ;;  %s27_s12 = int_to_ptr.vmem [resolvable:$true] %s26_s12 }
   0x4   :  { %s247_s15 = scalar_lea.hbm %s380_s0, 128 }
   0x5   :  { %p248_p0 = scmp.ne.s32.totalorder %s380_s0, %s247_s15  ;;  %p251_p1 = scmp.lt.u32.totalorder %s247_s15, %s380_s0 }
   0x7   :  { %p253_p2 = pnand %p251_p1, %p248_p0 }
   0x9   :  { %256 = shalt.err (!%p253_p2)
}
   0xa   :  { %s257_s20 = scalar_lea.vmem %s17_s10, 128  ;;  %p262_p4 = scmp.lt.s32.totalorder %s17_s10, %s17_s10 }
   0xb   :  { %p258_p3 = scmp.ne.s32.totalorder %s17_s10, %s257_s20  ;;  %p263_p5 = scmp.lt.s32.totalorder %s257_s20, %s257_s20 }
   0xd   :  { %p264_p6 = por %p263_p5, %p262_p4 }
   0xf   :  { %p265_p7 = pnand %p264_p6, %p258_p3 }
  0x11   :  { %268 = shalt.err (!%p265_p7)
}
  0x12   :  { %19 = dma.hbm_to_vmem [thread:$0]  %s380_s0, 128, %s17_s10, [#allocation5]  }
  0x13   :  { %s269_s25 = scalar_lea.hbm %s381_s1, 128 }
  0x14   :  { %p270_p8 = scmp.ne.s32.totalorder %s381_s1, %s269_s25  ;;  %p273_p9 = scmp.lt.u32.totalorder %s269_s25, %s381_s1 }
  0x16   :  { %p275_p10 = pnand %p273_p9, %p270_p8 }
  0x18   :  { %278 = shalt.err (!%p275_p10)
}
  0x19   :  { %s279_s30 = scalar_lea.vmem %s27_s12, 128  ;;  %p284_p12 = scmp.lt.s32.totalorder %s27_s12, %s27_s12 }
  0x1a   :  { %p280_p11 = scmp.ne.s32.totalorder %s27_s12, %s279_s30  ;;  %p285_p13 = scmp.lt.s32.totalorder %s279_s30, %s279_s30 }
  0x1c   :  { %p286_p0 = por %p285_p13, %p284_p12 }
  0x1e   :  { %p287_p1 = pnand %p286_p0, %p280_p11 }
  0x20   :  { %290 = shalt.err (!%p287_p1)
}
  0x21   :  { %29 = dma.hbm_to_vmem [thread:$0]  %s381_s1, 128, %s27_s12, [#allocation8]  }
  0x22   :  { %313 = dma.done.wait [#allocation5], 128  }
  0x23   :  { %314 = vsyncadd [#allocation5], 4294967168 }
  0x24   :  { %315 = dma.done.wait [#allocation8], 128  }
  0x25   :  { %316 = vsyncadd [#allocation8], 4294967168  ;;  %vm40_vm0 = vcmask 64512   ;;  %v321_v0 = vmov 0.0   ;;  %vm322_vm1 = vmmov 0   ;;  %v44_v1 = vld [vmem:[#allocation4] sm:$0xff] }
  0x26   :  { %230 = vmatprep.subr.mxu0 %v321_v0  ;;  %235 = vmatprep.subr.mxu1 %v321_v0  ;;  %41 = vst.msk [vmem:[#allocation2] sm:$0xff] %vm40_vm0, %v321_v0  ;;  %42 = vst.msk [vmem:[#allocation3] sm:$0xff] %vm40_vm0, %v321_v0  ;;  %v119_v2 = vld [vmem:[#allocation7] sm:$0xff]  ;;  %s323_s1 = smov [#allocation9]  }
  0x27   :  { %232 = vmatprep.mubr.msk.f32.mxu0 %vm322_vm1, %v321_v0  ;;  %237 = vmatprep.mubr.msk.f32.mxu1 %vm322_vm1, %v321_v0  ;;  %s216_s4 = sshll.u32 %s323_s1, 4  ;;  %s217_s4 = int_to_ptr.vmem [resolvable:$true] %s216_s4 }
  0x28   :  { %231 = vmatpush3.xpose.msra.mxu0 %v44_v1  ;;  %236 = vmatpush3.xpose.msra.mxu1 %v119_v2  ;;  %s291_s6 = scalar_lea.vmem %s217_s4, 16  ;;  %s295_s7 = scalar_lea.vmem %s217_s4, 32 }
  0x29   :  { %p292_p2 = scmp.ne.s32.totalorder %s217_s4, %s291_s6  ;;  %p296_p3 = scmp.lt.s32.totalorder %s217_s4, %s217_s4 }
  0x2a   :  { %p297_p4 = scmp.lt.s32.totalorder %s295_s7, %s291_s6 }
  0x2b   :  { %233 = vmatmul.mubr.f32.vlgmr.msra.gmra.mrb[0].mxu0 %v44_v1  ;;  %238 = vmatmul.mubr.f32.vlgmr.msra.gmra.mrb[0].mxu1 %v119_v2 }
  0x2c   :  { %p298_p5 = por %p297_p4, %p296_p3 }
  0x2d   :  { %v43_v3 = vld [vmem:[#allocation2] sm:$0xff]  ;;  %v118_v4 = vld [vmem:[#allocation3] sm:$0xff] }
  0x2e   :  { %p299_p6 = pnand %p298_p5, %p292_p2 }
  0xfe   :  { %v111_v5 = vpop.f32.mrb[0].mxu0  ;;  %v186_v6 = vpop.f32.mrb[0].mxu1 }
  0xff   :  { %v115_v7 = vadd.f32 %v111_v5, %v43_v3  ;;  %v190_v8 = vadd.f32 %v186_v6, %v118_v4  ;;  %v234_v9 = vpop.f32.mrb[1].mxu0  ;;  %v239_v10 = vpop.f32.mrb[1].mxu1 }
 0x101   :  { %117 = vst.msk [vmem:[#allocation2] sm:$0xff] %vm40_vm0, %v115_v7  ;;  %191 = vst.msk [vmem:[#allocation3] sm:$0xff] %vm40_vm0, %v190_v8 }
 0x108   :  { %v195_v11 = vld [vmem:[#allocation2] sm:$0xff]  ;;  %v196_v12 = vld [vmem:[#allocation3] sm:$0xff] }
 0x109   :  { %v197_v13 = vmul.f32 %v196_v12, %v195_v11 }
 0x10b   :  { %v198_v14 = vsel %vm40_vm0, %v197_v13, 0.0 }
 0x10c   :  { %199 = vadd.xlane.f32.xlu0 %v198_v14 }
 0x199   :  { %v200_v15 = vpop.xlane.xlu0 %199 }
 0x19a   :  { %v201_v16 = vrot.slane %v200_v15, 4 }
 0x19c   :  { %v202_v17 = vadd.f32 %v201_v16, %v200_v15 }
 0x19e   :  { %v203_v18 = vrot.slane %v202_v17, 2 }
 0x1a0   :  { %v204_v19 = vadd.f32 %v203_v18, %v202_v17 }
 0x1a2   :  { %v205_v20 = vrot.slane %v204_v19, 1 }
 0x1a4   :  { %v206_v21 = vadd.f32 %v205_v20, %v204_v19 }
 0x1a6   :  { %240 = vpush %v206_v21 }
 0x1d7   :  { %s241_s5 = spop %240 }
 0x1d8   :  { %v208_v22 = vstv %s241_s5 }
 0x1d9   :  { %209 = vst [vmem:[#allocation9] sm:$0x1] %v208_v22 }
 0x1da   :  { %302 = shalt.err (!%p299_p6)
}
 0x1db   :  { %s303_s10 = scalar_lea.hbm %s382_s2, 16 }
 0x1dc   :  { %p304_p7 = scmp.ne.s32.totalorder %s382_s2, %s303_s10  ;;  %p307_p8 = scmp.lt.u32.totalorder %s303_s10, %s382_s2 }
 0x1de   :  { %p309_p9 = pnand %p307_p8, %p304_p7 }
 0x1e0   :  { %312 = shalt.err (!%p309_p9)
}
 0x1e1   :  { %219 = dma.vmem_to_hbm [thread:$0]  %s217_s4, 16, %s382_s2, [#allocation6]  }
 0x1e2   :  { %317 = dma.done.wait [#allocation6], 16  }
 0x1e3   :  { %318 = vsyncadd [#allocation6], 4294967280 }
 0x1e4   :  { %223 = vsyncpa [#allocation5], 1 }
 0x1e5   :  { %224 = vsyncpa [#allocation8], 1 }
 0x1e6   :  { %225 = vsyncpa [#allocation6], 1 }

</bundles_post_ra>
